<compile_context>
chip_gen: v5e
topology: v5e:2x2
jax: 0.10.0
libtpu: 0.0.40
codegen_flags: <defaults>
</compile_context>

<pallas_src>
import functools

import jax
import jax.numpy as jnp
from jax.experimental import pallas as pl
from jax.experimental.pallas import tpu as pltpu


def _round_up(n: int, m: int) -> int:
    return ((n + m - 1) // m) * m


def _tiny_dqn_kernel(x_ref, w1_ref, b1_ref, w2_ref, b2_ref, o_ref):
    """One batch tile: o = relu(x @ W1 + b1) @ W2 + b2, all f32 accumulation."""
    # [TILE_B, S](bf16) @ [S, 32](bf16) -> f32 accumulator on the MXU.
    h = jnp.dot(x_ref[...], w1_ref[...], preferred_element_type=jnp.float32)
    h = jnp.maximum(h + b1_ref[...], 0.0)                      # bias + ReLU in f32
    # [TILE_B, 32](f32) @ [32, A](f32) -> f32.
    o = jnp.dot(h, w2_ref[...], preferred_element_type=jnp.float32)
    o_ref[...] = (o + b2_ref[...]).astype(o_ref.dtype)


def tiny_dqn_forward(x, w1, b1, w2, b2, *, tile_b: int = 1024, use_bf16: bool = True):
    """Fused TinyDQN forward.

    x:  [B, S] float32   (this is x['state'] from the PyTorch forward)
    w1: [S, 32], b1: [32], w2: [32, A], b2: [A]  (weights stored as [in, out])
    """
    B, S = x.shape
    H = w1.shape[1]
    A = w2.shape[1]

    in_dtype = jnp.bfloat16 if use_bf16 else jnp.float32
    x_c = x.astype(in_dtype)
    w1_c = w1.astype(in_dtype)
    w2_c = w2.astype(jnp.float32)
    b1_2d = b1.reshape(1, H).astype(jnp.float32)
    b2_2d = b2.reshape(1, A).astype(jnp.float32)

    # Batch tile: multiple of 8 (sublanes), capped so tiny batches don't over-pad.
    tb = max(8, min(tile_b, _round_up(B, 8)))
    tb = _round_up(tb, 8)
    b_pad = _round_up(B, tb)
    if b_pad != B:
        x_c = jnp.pad(x_c, ((0, b_pad - B), (0, 0)))

    grid = (b_pad // tb,)

    x_bytes = jnp.dtype(in_dtype).itemsize
    cost = pl.CostEstimate(
        flops=2 * b_pad * (S * H + H * A),
        transcendentals=0,
        bytes_accessed=b_pad * (S * x_bytes + A * 4) + (S * H) * x_bytes + (H * A + H + A) * 4,
    )

    out = pl.pallas_call(
        _tiny_dqn_kernel,
        out_shape=jax.ShapeDtypeStruct((b_pad, A), jnp.float32),
        grid=grid,
        in_specs=[
            pl.BlockSpec((tb, S), lambda i: (i, 0)),   # streamed per batch tile
            pl.BlockSpec((S, H), lambda i: (0, 0)),    # weights resident in VMEM
            pl.BlockSpec((1, H), lambda i: (0, 0)),
            pl.BlockSpec((H, A), lambda i: (0, 0)),
            pl.BlockSpec((1, A), lambda i: (0, 0)),
        ],
        out_specs=pl.BlockSpec((tb, A), lambda i: (i, 0)),
        compiler_params=pltpu.CompilerParams(
            dimension_semantics=("parallel",),          # v7x: shard batch over 2 TCs
            vmem_limit_bytes=32 * 1024 * 1024,          # explicit; tiny working set, safe on 64 MiB v7x
        ),
        cost_estimate=cost,
    )(x_c, w1_c, b1_2d, w2_c, b2_2d)

    return out[:B] if b_pad != B else out


def init_tiny_dqn_params(key, S, A, H=32):
    """Deterministic init mimicking PyTorch nn.Linear (U[-1/sqrt(fan_in), +1/sqrt(fan_in)]).
    Weights are stored as [in, out] (transposed vs. PyTorch's [out, in])."""
    k1, k2, k3, k4 = jax.random.split(key, 4)
    bound1 = 1.0 / jnp.sqrt(S)
    bound2 = 1.0 / jnp.sqrt(H)
    w1 = jax.random.uniform(k1, (S, H), jnp.float32, -bound1, bound1)
    b1 = jax.random.uniform(k2, (H,), jnp.float32, -bound1, bound1)
    w2 = jax.random.uniform(k3, (H, A), jnp.float32, -bound2, bound2)
    b2 = jax.random.uniform(k4, (A,), jnp.float32, -bound2, bound2)
    return w1, b1, w2, b2


if __name__ == "__main__":
    key = jax.random.PRNGKey(0)
    B, S, A = 2, 8, 4  # small shapes: batch=2, state dim S=8, actions A=4

    k_x, k_p, k_x2 = jax.random.split(key, 3)
    # `state` is the dict entry x['state'] from the PyTorch forward.
    state = jax.random.normal(k_x, (B, S), jnp.float32)
    w1, b1, w2, b2 = init_tiny_dqn_params(k_p, S, A)

    fwd = jax.jit(functools.partial(tiny_dqn_forward, tile_b=1024))
    out = fwd(state, w1, b1, w2, b2)
    jax.block_until_ready(out)

    # Pure-JAX f32 reference (kernel uses bf16 inputs -> slightly relaxed tolerance).
    ref = jnp.maximum(state @ w1 + b1, 0.0) @ w2 + b2
    assert out.shape == (B, A)
    assert jnp.allclose(out, ref, atol=2e-2, rtol=2e-2)

    # Exercise the multi-step grid + padded-tail path (B not a multiple of the tile).
    B2 = 40
    state2 = jax.random.normal(k_x2, (B2, S), jnp.float32)
    fwd2 = jax.jit(functools.partial(tiny_dqn_forward, tile_b=16))
    out2 = fwd2(state2, w1, b1, w2, b2)
    jax.block_until_ready(out2)
    ref2 = jnp.maximum(state2 @ w1 + b1, 0.0) @ w2 + b2
    assert out2.shape == (B2, A)
    assert jnp.allclose(out2, ref2, atol=2e-2, rtol=2e-2)

    print("KERNEL_OK")
</pallas_src>

<mosaic_0001>
module attributes {stable_mosaic.version = 11 : i64} {
  func.func @_tiny_dqn_kernel(%arg0: i32, %arg1: memref<8x8xbf16, #tpu.memory_space<vmem>>, %arg2: memref<8x32xbf16, #tpu.memory_space<vmem>>, %arg3: memref<1x32xf32, #tpu.memory_space<vmem>>, %arg4: memref<32x4xf32, #tpu.memory_space<vmem>>, %arg5: memref<1x4xf32, #tpu.memory_space<vmem>>, %arg6: memref<8x4xf32, #tpu.memory_space<vmem>>) attributes {dimension_semantics = [#tpu.dimension_semantics<parallel>], iteration_bounds = array<i64: 1>, scalar_prefetch = 0 : i64, scratch_operands = 0 : i64, tpu.core_type = #tpu.core_type<tc>, window_params = [{transform_indices = @transform_0, window_bounds = array<i64: 8, 8>}, {pipeline_mode = #tpu.pipeline_mode<synchronous>, transform_indices = @transform_1, window_bounds = array<i64: 8, 32>}, {pipeline_mode = #tpu.pipeline_mode<synchronous>, transform_indices = @transform_2, window_bounds = array<i64: 1, 32>}, {pipeline_mode = #tpu.pipeline_mode<synchronous>, transform_indices = @transform_3, window_bounds = array<i64: 32, 4>}, {pipeline_mode = #tpu.pipeline_mode<synchronous>, transform_indices = @transform_4, window_bounds = array<i64: 1, 4>}, {transform_indices = @transform_5, window_bounds = array<i64: 8, 4>}]} {
    %c0 = arith.constant 0 : index
    %c0_0 = arith.constant 0 : index
    %0 = vector.load %arg1[%c0, %c0_0] : memref<8x8xbf16, #tpu.memory_space<vmem>>, vector<8x8xbf16>
    %c0_1 = arith.constant 0 : index
    %c0_2 = arith.constant 0 : index
    %1 = vector.load %arg2[%c0_1, %c0_2] : memref<8x32xbf16, #tpu.memory_space<vmem>>, vector<8x32xbf16>
    %cst = arith.constant dense<0.000000e+00> : vector<8x32xf32>
    %2 = tpu.matmul %0, %1, %cst {dimension_numbers = #tpu.dot_dimension_numbers<[1], [0], [0], [1], [0, 0, 1, 1], [], []>} : vector<8x8xbf16>, vector<8x32xbf16>, vector<8x32xf32> -> vector<8x32xf32>
    %c0_3 = arith.constant 0 : index
    %c0_4 = arith.constant 0 : index
    %3 = vector.load %arg3[%c0_3, %c0_4] : memref<1x32xf32, #tpu.memory_space<vmem>>, vector<1x32xf32>
    %4 = vector.broadcast %3 : vector<1x32xf32> to vector<8x32xf32>
    %5 = arith.addf %2, %4 : vector<8x32xf32>
    %cst_5 = arith.constant 0.000000e+00 : f32
    %6 = vector.broadcast %cst_5 : f32 to vector<8x32xf32>
    %7 = arith.maximumf %5, %6 : vector<8x32xf32>
    %c0_6 = arith.constant 0 : index
    %c0_7 = arith.constant 0 : index
    %8 = vector.load %arg4[%c0_6, %c0_7] : memref<32x4xf32, #tpu.memory_space<vmem>>, vector<32x4xf32>
    %cst_8 = arith.constant dense<0.000000e+00> : vector<8x4xf32>
    %9 = tpu.matmul %7, %8, %cst_8 {dimension_numbers = #tpu.dot_dimension_numbers<[1], [0], [0], [1], [0, 0, 1, 1], [], []>} : vector<8x32xf32>, vector<32x4xf32>, vector<8x4xf32> -> vector<8x4xf32>
    %c0_9 = arith.constant 0 : index
    %c0_10 = arith.constant 0 : index
    %10 = vector.load %arg5[%c0_9, %c0_10] : memref<1x4xf32, #tpu.memory_space<vmem>>, vector<1x4xf32>
    %11 = vector.broadcast %10 : vector<1x4xf32> to vector<8x4xf32>
    %12 = arith.addf %9, %11 : vector<8x4xf32>
    %c0_11 = arith.constant 0 : index
    %c0_12 = arith.constant 0 : index
    %13 = vector.load %arg6[%c0_11, %c0_12] : memref<8x4xf32, #tpu.memory_space<vmem>>, vector<8x4xf32>
    tpu.vector_store %arg6[%c0_11, %c0_12], %12 {strides = array<i32>} : memref<8x4xf32, #tpu.memory_space<vmem>>, vector<8x4xf32>,
    return
  }
  func.func @transform_0(%arg0: i32) -> (i32, i32) {
    %c0_i32 = arith.constant 0 : i32
    %c0_i32_0 = arith.constant 0 : i32
    return %arg0, %c0_i32 : i32, i32
  }
  func.func @transform_1(%arg0: i32) -> (i32, i32) {
    %c0_i32 = arith.constant 0 : i32
    %c0_i32_0 = arith.constant 0 : i32
    %c0_i32_1 = arith.constant 0 : i32
    return %c0_i32, %c0_i32_0 : i32, i32
  }
  func.func @transform_2(%arg0: i32) -> (i32, i32) {
    %c0_i32 = arith.constant 0 : i32
    %c0_i32_0 = arith.constant 0 : i32
    %c0_i32_1 = arith.constant 0 : i32
    return %c0_i32, %c0_i32_0 : i32, i32
  }
  func.func @transform_3(%arg0: i32) -> (i32, i32) {
    %c0_i32 = arith.constant 0 : i32
    %c0_i32_0 = arith.constant 0 : i32
    %c0_i32_1 = arith.constant 0 : i32
    return %c0_i32, %c0_i32_0 : i32, i32
  }
  func.func @transform_4(%arg0: i32) -> (i32, i32) {
    %c0_i32 = arith.constant 0 : i32
    %c0_i32_0 = arith.constant 0 : i32
    %c0_i32_1 = arith.constant 0 : i32
    return %c0_i32, %c0_i32_0 : i32, i32
  }
  func.func @transform_5(%arg0: i32) -> (i32, i32) {
    %c0_i32 = arith.constant 0 : i32
    %c0_i32_0 = arith.constant 0 : i32
    return %arg0, %c0_i32 : i32, i32
  }
}

</mosaic_0001>

<bundles_post_ra>
// kernel: tiny_dqn_forward.1
= control target key start
LH: loop header
LB: loop body
LE: loop exit
PB: predicated region body
PF: predicated region fallthrough
CT: control target
= control target key end

     0   :  { %vm31_vm0 = vcmask 1043456   ;;  %vm27_vm1 = vcmask 64512   ;;  %vm57_vm2 = vcmask 261120   ;;  %vm81_vm3 = vcmask 31744   ;;  %s148_s1 = inlined_call_operand.vmem [shape: bf16[8,32], index: 1, kind: input, shape index: {}]   ;;  %s149_s0 = inlined_call_operand.vmem [shape: bf16[8,8], index: 0, kind: input, shape index: {}]   ;;  %s150_s3 = inlined_call_operand.vmem [shape: f32[32,4], index: 3, kind: input, shape index: {}]   ;;  %s151_s2 = inlined_call_operand.vmem [shape: f32[1,32], index: 2, kind: input, shape index: {}]   ;;  %s152_s4 = inlined_call_operand.vmem [shape: f32[1,4], index: 4, kind: input, shape index: {}]   ;;  %s153_s5 = inlined_call_operand.vmem [shape: f32[8,4], index: 5, kind: output, shape index: {}]  }
   0x1   :  { %v22_v0 = vld [vmem:[%s148_s1] sm:$0xf]  ;;  %v52_v1 = vld [vmem:[%s150_s3 + $0x18] sm:$0xff]  ;;  %v51_v4 = vld [vmem:[%s150_s3 + $0x10] sm:$0xff] }
   0x2   :  { %v33_v2 = vsel %vm31_vm0, %v22_v0, 0  ;;  %73 = vmatpush.msra.mxu1 %v52_v1  ;;  %v21_v3 = vld [vmem:[%s149_s0] sm:$0xf]  ;;  %v50_v5 = vld [vmem:[%s150_s3 + $0x8] sm:$0xff] }
   0x3   :  { %42 = vmatpush.bf16.msra.mxu0 %v33_v2  ;;  %v49_v6 = vld [vmem:[%s150_s3] sm:$0xff] }
   0x4   :  { %74 = vmatpush.msra.mxu1 %v51_v4  ;;  %v89_v7 = vld [vmem:[%s151_s2] ss:$0 sm:$0xff] }
   0x5   :  { %v90_v12 = vld [vmem:[%s152_s4] ss:$0 sm:$0xff] }
   0x6   :  { %87 = vmatmul.msk.bf16.vlgmr.msra.gmra.mxu0 %vm27_vm1, %v21_v3  ;;  %75 = vmatpush.msra.mxu1 %v50_v5 }
   0x8   :  { %76 = vmatpush.msra.mxu1 %v49_v6 }
  0x83   :  { %v44_v8 = vpop.f32.mrf.mxu0 }
  0x84   :  { %v45_v9 = vadd.f32 %v89_v7, %v44_v8 }
  0x86   :  { %v48_v10 = vmax.f32 %v45_v9, 0.0 }
  0x88   :  { %88 = vmatmul.msk.f32.vlgmr.msra.gmra.mxu1 %vm57_vm2, %v48_v10 }
  0x8b   :  { %v46_v11 = vpop.f32.mrf.mxu0 }
 0x105   :  { %v78_v13 = vpop.f32.mrf.mxu1 }
 0x106   :  { %v79_v14 = vadd.f32 %v90_v12, %v78_v13 }
 0x108   :  { %82 = vst.msk [vmem:[%s153_s5] sm:$0xff] %vm81_vm3, %v79_v14 }

</bundles_post_ra>
